<compile_context>
chip_gen: v6e
topology: v6e:2x2x1
jax: 0.10.0
libtpu: 0.0.40
codegen_flags: <defaults>
</compile_context>

<pallas_src>
import functools
import math

import jax
import jax.numpy as jnp
from jax.experimental import pallas as pl
from jax.experimental.pallas import tpu as pltpu

QK_DIM_DIV = 8
EXPAND_FACTOR = 2
LN_EPS = 1e-5


def _layer_norm(x):
    mean = jnp.mean(x, axis=-1, keepdims=True)
    xc = x - mean
    var = jnp.mean(xc * xc, axis=-1, keepdims=True)
    return xc * jax.lax.rsqrt(var + LN_EPS)


def _gelu_exact(x):
    # torch.nn.functional.gelu default (erf form)
    return 0.5 * x * (1.0 + jax.lax.erf(x * 0.7071067811865476))


def _attention_kernel(x_ref, mask_ref, wq_ref, wk_ref, wll_ref, wpl_ref,
                      wlv_ref, wpv_ref, ptop_ref, pbot_ref,
                      o_ref, k_scr, v_scr, *, scale):
    n, _ = x_ref.shape
    tq = o_ref.shape[0]
    qi = pl.program_id(1)
    mxu = wq_ref.dtype          # MXU operand dtype chosen by the wrapper

    def row_start(i):
        off = i * tq
        return pl.multiple_of(off, 8) if tq % 8 == 0 else off

    # ---- once per batch: K and V for the full sequence into VMEM scratch ----
    @pl.when(qi == 0)
    def _():
        def body(c, carry):
            r = row_start(c)
            xc = x_ref[pl.ds(r, tq), :].astype(jnp.float32)
            nx = _layer_norm(xc).astype(mxu)
            k = jnp.dot(nx, wk_ref[...], preferred_element_type=jnp.float32)
            lin_v = jnp.dot(nx, wlv_ref[...], preferred_element_type=jnp.float32)
            pg_v = jnp.dot(nx, wpv_ref[...], preferred_element_type=jnp.float32)
            v = lin_v * _gelu_exact(pg_v)
            k_scr[pl.ds(r, tq), :] = k.astype(k_scr.dtype)
            v_scr[pl.ds(r, tq), :] = v.astype(v_scr.dtype)
            return carry

        jax.lax.fori_loop(0, n // tq, body, 0)

    # ---- per query tile ----
    r = row_start(qi)
    xt = x_ref[pl.ds(r, tq), :].astype(jnp.float32)
    nxt = _layer_norm(xt).astype(mxu)

    q = jnp.dot(nxt, wq_ref[...], preferred_element_type=jnp.float32)
    lin_l = jnp.dot(nxt, wll_ref[...], preferred_element_type=jnp.float32)
    pg_l = jnp.dot(nxt, wpl_ref[...], preferred_element_type=jnp.float32)
    local = lin_l * _gelu_exact(pg_l)

    # scores: [tq, N] slab against the full-sequence K held in VMEM scratch
    s = jax.lax.dot_general(
        q.astype(mxu), k_scr[...],
        (((1,), (1,)), ((), ())), preferred_element_type=jnp.float32)
    s = s * jnp.float32(scale) + mask_ref[...]

    m = jnp.max(s, axis=-1, keepdims=True)
    p = jnp.exp(s - m)
    denom = jnp.sum(p, axis=-1, keepdims=True)

    attn = jnp.dot(p.astype(mxu), v_scr[...], preferred_element_type=jnp.float32)
    attn = attn * pl.reciprocal(denom, approx=True)

    out = (xt
           + jnp.dot(local.astype(mxu), ptop_ref[...],
                     preferred_element_type=jnp.float32)
           + jnp.dot(attn.astype(mxu), pbot_ref[...],
                     preferred_element_type=jnp.float32))
    o_ref[...] = out.astype(o_ref.dtype)


def _round_up(x, m):
    return ((x + m - 1) // m) * m


def _choose_q_tile(n, target):
    tq = min(target, n)
    while tq > 8 and n % tq != 0:
        tq -= 8
    if n % tq != 0:
        tq = n
    return tq


@functools.partial(jax.jit, static_argnames=("q_tile", "mxu_dtype"))
def attention_layer(x, expand_w, project_w, bias_mult, *, q_tile=256,
                    mxu_dtype=jnp.bfloat16):
    B, N, D = x.shape
    qk = D // QK_DIM_DIV
    ed = EXPAND_FACTOR * D
    local_d = ed - D
    assert expand_w.shape == (D, 2 * qk + 2 * ed)
    assert project_w.shape == (ed, D)

    tq = _choose_q_tile(N, q_tile)
    nq = N // tq

    # --- split + pad weights at the pallas_call boundary (layout plumbing,
    #     removes every unaligned lane slice from the kernel) ---
    qk_pad = _round_up(qk, 128)
    wq = expand_w[:, :qk]
    wk = expand_w[:, qk:2 * qk]
    if qk_pad != qk:
        zpad = jnp.zeros((D, qk_pad - qk), expand_w.dtype)
        wq = jnp.concatenate([wq, zpad], axis=1)
        wk = jnp.concatenate([wk, zpad], axis=1)
    w_lin = expand_w[:, 2 * qk:2 * qk + ed]
    w_pg = expand_w[:, 2 * qk + ed:]
    wll = w_lin[:, :local_d]
    wlv = w_lin[:, local_d:]
    wpl = w_pg[:, :local_d]
    wpv = w_pg[:, local_d:]
    ptop = project_w[:local_d, :]
    pbot = project_w[local_d:, :]
    wq, wk, wll, wpl, wlv, wpv, ptop, pbot = (
        w.astype(mxu_dtype) for w in (wq, wk, wll, wpl, wlv, wpv, ptop, pbot))

    # --- precompute the sigmoid position-bias / causal mask once (f32) ---
    idx = jnp.arange(N, dtype=jnp.int32)
    rel = (idx[None, :] - idx[:, None]).astype(jnp.float32)
    bias = jax.nn.sigmoid(rel + jnp.asarray(bias_mult, jnp.float32))
    mask = jnp.where(idx[None, :] <= idx[:, None], bias,
                     jnp.float32(-jnp.inf))

    def full(shape):
        return pl.BlockSpec(shape, lambda b, qi: (0,) * len(shape))

    kernel = functools.partial(_attention_kernel,
                               scale=float(1.0 / math.sqrt(qk)))

    return pl.pallas_call(
        kernel,
        out_shape=jax.ShapeDtypeStruct((B, N, D), x.dtype),
        grid=(B, nq),
        in_specs=[
            pl.BlockSpec((None, N, D), lambda b, qi: (b, 0, 0)),   # x, full seq
            pl.BlockSpec((tq, N), lambda b, qi: (qi, 0)),          # mask slab
            full((D, qk_pad)),                                     # wq (padded)
            full((D, qk_pad)),                                     # wk (padded)
            full((D, local_d)),                                    # w_lin_local
            full((D, local_d)),                                    # w_pg_local
            full((D, D)),                                          # w_lin_v
            full((D, D)),                                          # w_pg_v
            full((local_d, D)),                                    # p_top
            full((D, D)),                                          # p_bot
        ],
        out_specs=pl.BlockSpec((None, tq, D), lambda b, qi: (b, qi, 0)),
        scratch_shapes=[
            pltpu.VMEM((N, qk_pad), mxu_dtype),   # K, full sequence
            pltpu.VMEM((N, D), mxu_dtype),        # V, full sequence
        ],
        compiler_params=pltpu.CompilerParams(
            dimension_semantics=("parallel", "arbitrary"),
            vmem_limit_bytes=64 * 1024 * 1024),
    )(x, mask, wq, wk, wll, wpl, wlv, wpv, ptop, pbot)


def reference(x, expand_w, project_w, bias_mult):
    """Pure-JAX f32 reference mirroring the PyTorch forward."""
    D = x.shape[-1]
    qk, ed = D // QK_DIM_DIV, EXPAND_FACTOR * D
    mean = jnp.mean(x, -1, keepdims=True)
    var = jnp.mean((x - mean) ** 2, -1, keepdims=True)
    nx = (x - mean) / jnp.sqrt(var + LN_EPS)
    e = nx @ expand_w
    q, k, lin, pg = jnp.split(e, [qk, 2 * qk, 2 * qk + ed], axis=-1)
    gated = lin * jax.nn.gelu(pg, approximate=False)
    local, v = gated[..., :ed - D], gated[..., ed - D:]
    n = x.shape[1]
    idx = jnp.arange(n)
    pos = (idx[None, :] - idx[:, None]).astype(jnp.float32)
    mask = jnp.where(idx[None, :] <= idx[:, None],
                     jax.nn.sigmoid(pos + bias_mult), -jnp.inf)
    s = jnp.einsum('bnk,bmk->bnm', q, k) / jnp.sqrt(float(qk)) + mask
    scores = jax.nn.softmax(s, -1)
    attn = jnp.einsum('bnm,bmd->bnd', scores, v)
    return x + jnp.concatenate([local, attn], -1) @ project_w


def xavier_uniform(key, shape):
    fan_in, fan_out = shape
    bound = (6.0 / (fan_in + fan_out)) ** 0.5
    return jax.random.uniform(key, shape, jnp.float32, -bound, bound)


if __name__ == "__main__":
    # Small, module-consistent shapes: dim divisible by qk_dim_div = 8.
    B, N, D = 2, 16, 64
    QK, ED = D // QK_DIM_DIV, EXPAND_FACTOR * D

    key = jax.random.PRNGKey(0)
    kx, ke, kp = jax.random.split(key, 3)
    x = jax.random.normal(kx, (B, N, D), jnp.float32)
    expand_w = xavier_uniform(ke, (D, 2 * QK + 2 * ED))
    project_w = xavier_uniform(kp, (ED, D))
    bias_mult = jnp.float32(4.0)  # position_bias_mult init

    ref = reference(x, expand_w, project_w, bias_mult)

    # Exact-semantics path (f32 MXU operands), small q-tile to exercise the
    # multi-q-tile / persistent K-V scratch path.
    out_f32 = attention_layer(x, expand_w, project_w, bias_mult,
                              q_tile=8, mxu_dtype=jnp.float32)
    jax.block_until_ready(out_f32)
    assert out_f32.shape == (B, N, D)
    assert jnp.allclose(out_f32, ref, atol=1e-3, rtol=1e-3), \
        "f32 kernel mismatch vs JAX reference"

    # Default fast path: bf16 MXU operands, f32 accumulation.
    out_bf16 = attention_layer(x, expand_w, project_w, bias_mult)
    jax.block_until_ready(out_bf16)
    assert out_bf16.shape == (B, N, D)
    assert jnp.allclose(out_bf16, ref, atol=3e-2, rtol=3e-2), \
        "bf16 kernel mismatch vs JAX reference"

    print("KERNEL_OK")
</pallas_src>

<mosaic_0001>
module attributes {stable_mosaic.version = 11 : i64} {
  func.func @_attention_kernel(%arg0: i32, %arg1: i32, %arg2: memref<1x16x64xf32, #tpu.memory_space<vmem>>, %arg3: memref<8x16xf32, #tpu.memory_space<vmem>>, %arg4: memref<64x128xf32, #tpu.memory_space<vmem>>, %arg5: memref<64x128xf32, #tpu.memory_space<vmem>>, %arg6: memref<64x64xf32, #tpu.memory_space<vmem>>, %arg7: memref<64x64xf32, #tpu.memory_space<vmem>>, %arg8: memref<64x64xf32, #tpu.memory_space<vmem>>, %arg9: memref<64x64xf32, #tpu.memory_space<vmem>>, %arg10: memref<64x64xf32, #tpu.memory_space<vmem>>, %arg11: memref<64x64xf32, #tpu.memory_space<vmem>>, %arg12: memref<1x8x64xf32, #tpu.memory_space<vmem>>, %arg13: memref<16x128xf32, #tpu.memory_space<vmem>>, %arg14: memref<16x64xf32, #tpu.memory_space<vmem>>) attributes {dimension_semantics = [#tpu.dimension_semantics<parallel>, #tpu.dimension_semantics<arbitrary>], iteration_bounds = array<i64: 2, 2>, scalar_prefetch = 0 : i64, scratch_operands = 2 : i64, tpu.core_type = #tpu.core_type<tc>, window_params = [{transform_indices = @transform_0, window_bounds = array<i64: 1, 16, 64>}, {transform_indices = @transform_1, window_bounds = array<i64: 8, 16>}, {pipeline_mode = #tpu.pipeline_mode<synchronous>, transform_indices = @transform_2, window_bounds = array<i64: 64, 128>}, {pipeline_mode = #tpu.pipeline_mode<synchronous>, transform_indices = @transform_3, window_bounds = array<i64: 64, 128>}, {pipeline_mode = #tpu.pipeline_mode<synchronous>, transform_indices = @transform_4, window_bounds = array<i64: 64, 64>}, {pipeline_mode = #tpu.pipeline_mode<synchronous>, transform_indices = @transform_5, window_bounds = array<i64: 64, 64>}, {pipeline_mode = #tpu.pipeline_mode<synchronous>, transform_indices = @transform_6, window_bounds = array<i64: 64, 64>}, {pipeline_mode = #tpu.pipeline_mode<synchronous>, transform_indices = @transform_7, window_bounds = array<i64: 64, 64>}, {pipeline_mode = #tpu.pipeline_mode<synchronous>, transform_indices = @transform_8, window_bounds = array<i64: 64, 64>}, {pipeline_mode = #tpu.pipeline_mode<synchronous>, transform_indices = @transform_9, window_bounds = array<i64: 64, 64>}, {transform_indices = @transform_10, window_bounds = array<i64: 1, 8, 64>}]} {
    %c0_i32 = arith.constant 0 : i32
    %0 = arith.cmpi eq, %arg1, %c0_i32 : i32
    %1 = arith.extui %0 : i1 to i32
    %c0_i32_0 = arith.constant 0 : i32
    %2 = arith.cmpi ne, %1, %c0_i32_0 : i32
    scf.if %2 {
      %c0_i32_38 = arith.constant 0 : i32
      %c2_i32 = arith.constant 2 : i32
      %66 = arith.addi %c0_i32_38, %c2_i32 : i32
      %c1_i32 = arith.constant 1 : i32
      scf.for %arg15 = %c0_i32_38 to %66 step %c1_i32  : i32 {
        %c8_i32_40 = arith.constant 8 : i32
        %67 = arith.muli %arg15, %c8_i32_40 : i32
        %68 = tpu.assume_multiple %67, 8 : i32
        %c0_41 = arith.constant 0 : index
        %69 = arith.index_cast %68 : i32 to index
        %c0_42 = arith.constant 0 : index
        %70 = vector.load %arg2[%c0_41, %69, %c0_42] : memref<1x16x64xf32, #tpu.memory_space<vmem>>, vector<1x8x64xf32>
        %71 = vector.shape_cast %70 : vector<1x8x64xf32> to vector<8x64xf32>
        %cst_43 = arith.constant dense<0.000000e+00> : vector<8xf32>
        %72 = vector.multi_reduction <add>, %71, %cst_43 [1] : vector<8x64xf32> to vector<8xf32>
        %73 = vector.shape_cast %72 : vector<8xf32> to vector<8x1xf32>
        %cst_44 = arith.constant 6.400000e+01 : f32
        %74 = vector.broadcast %cst_44 : f32 to vector<8x1xf32>
        %75 = arith.divf %73, %74 : vector<8x1xf32>
        %76 = vector.broadcast %75 : vector<8x1xf32> to vector<8x64xf32>
        %77 = arith.subf %71, %76 : vector<8x64xf32>
        %78 = arith.mulf %77, %77 : vector<8x64xf32>
        %cst_45 = arith.constant dense<0.000000e+00> : vector<8xf32>
        %79 = vector.multi_reduction <add>, %78, %cst_45 [1] : vector<8x64xf32> to vector<8xf32>
        %80 = vector.shape_cast %79 : vector<8xf32> to vector<8x1xf32>
        %cst_46 = arith.constant 6.400000e+01 : f32
        %81 = vector.broadcast %cst_46 : f32 to vector<8x1xf32>
        %82 = arith.divf %80, %81 : vector<8x1xf32>
        %cst_47 = arith.constant 9.99999974E-6 : f32
        %83 = vector.broadcast %cst_47 : f32 to vector<8x1xf32>
        %84 = arith.addf %82, %83 : vector<8x1xf32>
        %85 = math.rsqrt %84 : vector<8x1xf32>
        %86 = vector.broadcast %85 : vector<8x1xf32> to vector<8x64xf32>
        %87 = arith.mulf %77, %86 : vector<8x64xf32>
        %c0_48 = arith.constant 0 : index
        %c0_49 = arith.constant 0 : index
        %88 = vector.load %arg5[%c0_48, %c0_49] : memref<64x128xf32, #tpu.memory_space<vmem>>, vector<64x128xf32>
        %cst_50 = arith.constant dense<0.000000e+00> : vector<8x128xf32>
        %89 = tpu.matmul %87, %88, %cst_50 {dimension_numbers = #tpu.dot_dimension_numbers<[1], [0], [0], [1], [0, 0, 1, 1], [], []>} : vector<8x64xf32>, vector<64x128xf32>, vector<8x128xf32> -> vector<8x128xf32>
        %c0_51 = arith.constant 0 : index
        %c0_52 = arith.constant 0 : index
        %90 = vector.load %arg8[%c0_51, %c0_52] : memref<64x64xf32, #tpu.memory_space<vmem>>, vector<64x64xf32>
        %cst_53 = arith.constant dense<0.000000e+00> : vector<8x64xf32>
        %91 = tpu.matmul %87, %90, %cst_53 {dimension_numbers = #tpu.dot_dimension_numbers<[1], [0], [0], [1], [0, 0, 1, 1], [], []>} : vector<8x64xf32>, vector<64x64xf32>, vector<8x64xf32> -> vector<8x64xf32>
        %c0_54 = arith.constant 0 : index
        %c0_55 = arith.constant 0 : index
        %92 = vector.load %arg9[%c0_54, %c0_55] : memref<64x64xf32, #tpu.memory_space<vmem>>, vector<64x64xf32>
        %cst_56 = arith.constant dense<0.000000e+00> : vector<8x64xf32>
        %93 = tpu.matmul %87, %92, %cst_56 {dimension_numbers = #tpu.dot_dimension_numbers<[1], [0], [0], [1], [0, 0, 1, 1], [], []>} : vector<8x64xf32>, vector<64x64xf32>, vector<8x64xf32> -> vector<8x64xf32>
        %cst_57 = arith.constant 5.000000e-01 : f32
        %94 = vector.broadcast %cst_57 : f32 to vector<8x64xf32>
        %95 = arith.mulf %94, %93 : vector<8x64xf32>
        %cst_58 = arith.constant 0.707106769 : f32
        %96 = vector.broadcast %cst_58 : f32 to vector<8x64xf32>
        %97 = arith.mulf %93, %96 : vector<8x64xf32>
        %98 = math.erf %97 : vector<8x64xf32>
        %cst_59 = arith.constant 1.000000e+00 : f32
        %99 = vector.broadcast %cst_59 : f32 to vector<8x64xf32>
        %100 = arith.addf %99, %98 : vector<8x64xf32>
        %101 = arith.mulf %95, %100 : vector<8x64xf32>
        %102 = arith.mulf %91, %101 : vector<8x64xf32>
        %103 = arith.index_cast %68 : i32 to index
        %c0_60 = arith.constant 0 : index
        %104 = vector.load %arg13[%103, %c0_60] : memref<16x128xf32, #tpu.memory_space<vmem>>, vector<8x128xf32>
        tpu.vector_store %arg13[%103, %c0_60], %89 {strides = array<i32>} : memref<16x128xf32, #tpu.memory_space<vmem>>, vector<8x128xf32>,
        %105 = arith.index_cast %68 : i32 to index
        %c0_61 = arith.constant 0 : index
        %106 = vector.load %arg14[%105, %c0_61] : memref<16x64xf32, #tpu.memory_space<vmem>>, vector<8x64xf32>
        tpu.vector_store %arg14[%105, %c0_61], %102 {strides = array<i32>} : memref<16x64xf32, #tpu.memory_space<vmem>>, vector<8x64xf32>,
      }
      %c2_i32_39 = arith.constant 2 : i32
    } else {
    }
    %c8_i32 = arith.constant 8 : i32
    %3 = arith.muli %arg1, %c8_i32 : i32
    %4 = tpu.assume_multiple %3, 8 : i32
    %c0 = arith.constant 0 : index
    %5 = arith.index_cast %4 : i32 to index
    %c0_1 = arith.constant 0 : index
    %6 = vector.load %arg2[%c0, %5, %c0_1] : memref<1x16x64xf32, #tpu.memory_space<vmem>>, vector<1x8x64xf32>
    %7 = vector.shape_cast %6 : vector<1x8x64xf32> to vector<8x64xf32>
    %cst = arith.constant dense<0.000000e+00> : vector<8xf32>
    %8 = vector.multi_reduction <add>, %7, %cst [1] : vector<8x64xf32> to vector<8xf32>
    %9 = vector.shape_cast %8 : vector<8xf32> to vector<8x1xf32>
    %cst_2 = arith.constant 6.400000e+01 : f32
    %10 = vector.broadcast %cst_2 : f32 to vector<8x1xf32>
    %11 = arith.divf %9, %10 : vector<8x1xf32>
    %12 = vector.broadcast %11 : vector<8x1xf32> to vector<8x64xf32>
    %13 = arith.subf %7, %12 : vector<8x64xf32>
    %14 = arith.mulf %13, %13 : vector<8x64xf32>
    %cst_3 = arith.constant dense<0.000000e+00> : vector<8xf32>
    %15 = vector.multi_reduction <add>, %14, %cst_3 [1] : vector<8x64xf32> to vector<8xf32>
    %16 = vector.shape_cast %15 : vector<8xf32> to vector<8x1xf32>
    %cst_4 = arith.constant 6.400000e+01 : f32
    %17 = vector.broadcast %cst_4 : f32 to vector<8x1xf32>
    %18 = arith.divf %16, %17 : vector<8x1xf32>
    %cst_5 = arith.constant 9.99999974E-6 : f32
    %19 = vector.broadcast %cst_5 : f32 to vector<8x1xf32>
    %20 = arith.addf %18, %19 : vector<8x1xf32>
    %21 = math.rsqrt %20 : vector<8x1xf32>
    %22 = vector.broadcast %21 : vector<8x1xf32> to vector<8x64xf32>
    %23 = arith.mulf %13, %22 : vector<8x64xf32>
    %c0_6 = arith.constant 0 : index
    %c0_7 = arith.constant 0 : index
    %24 = vector.load %arg4[%c0_6, %c0_7] : memref<64x128xf32, #tpu.memory_space<vmem>>, vector<64x128xf32>
    %cst_8 = arith.constant dense<0.000000e+00> : vector<8x128xf32>
    %25 = tpu.matmul %23, %24, %cst_8 {dimension_numbers = #tpu.dot_dimension_numbers<[1], [0], [0], [1], [0, 0, 1, 1], [], []>} : vector<8x64xf32>, vector<64x128xf32>, vector<8x128xf32> -> vector<8x128xf32>
    %c0_9 = arith.constant 0 : index
    %c0_10 = arith.constant 0 : index
    %26 = vector.load %arg6[%c0_9, %c0_10] : memref<64x64xf32, #tpu.memory_space<vmem>>, vector<64x64xf32>
    %cst_11 = arith.constant dense<0.000000e+00> : vector<8x64xf32>
    %27 = tpu.matmul %23, %26, %cst_11 {dimension_numbers = #tpu.dot_dimension_numbers<[1], [0], [0], [1], [0, 0, 1, 1], [], []>} : vector<8x64xf32>, vector<64x64xf32>, vector<8x64xf32> -> vector<8x64xf32>
    %c0_12 = arith.constant 0 : index
    %c0_13 = arith.constant 0 : index
    %28 = vector.load %arg7[%c0_12, %c0_13] : memref<64x64xf32, #tpu.memory_space<vmem>>, vector<64x64xf32>
    %cst_14 = arith.constant dense<0.000000e+00> : vector<8x64xf32>
    %29 = tpu.matmul %23, %28, %cst_14 {dimension_numbers = #tpu.dot_dimension_numbers<[1], [0], [0], [1], [0, 0, 1, 1], [], []>} : vector<8x64xf32>, vector<64x64xf32>, vector<8x64xf32> -> vector<8x64xf32>
    %cst_15 = arith.constant 5.000000e-01 : f32
    %30 = vector.broadcast %cst_15 : f32 to vector<8x64xf32>
    %31 = arith.mulf %30, %29 : vector<8x64xf32>
    %cst_16 = arith.constant 0.707106769 : f32
    %32 = vector.broadcast %cst_16 : f32 to vector<8x64xf32>
    %33 = arith.mulf %29, %32 : vector<8x64xf32>
    %34 = math.erf %33 : vector<8x64xf32>
    %cst_17 = arith.constant 1.000000e+00 : f32
    %35 = vector.broadcast %cst_17 : f32 to vector<8x64xf32>
    %36 = arith.addf %35, %34 : vector<8x64xf32>
    %37 = arith.mulf %31, %36 : vector<8x64xf32>
    %38 = arith.mulf %27, %37 : vector<8x64xf32>
    %c0_18 = arith.constant 0 : index
    %c0_19 = arith.constant 0 : index
    %39 = vector.load %arg13[%c0_18, %c0_19] : memref<16x128xf32, #tpu.memory_space<vmem>>, vector<16x128xf32>
    %cst_20 = arith.constant dense<0.000000e+00> : vector<8x16xf32>
    %40 = tpu.matmul %25, %39, %cst_20 {dimension_numbers = #tpu.dot_dimension_numbers<[1], [1], [0], [0], [0, 0, 1, 0], [], []>} : vector<8x128xf32>, vector<16x128xf32>, vector<8x16xf32> -> vector<8x16xf32>
    %cst_21 = arith.constant 0.353553385 : f32
    %41 = vector.broadcast %cst_21 : f32 to vector<8x16xf32>
    %42 = arith.mulf %40, %41 : vector<8x16xf32>
    %c0_22 = arith.constant 0 : index
    %c0_23 = arith.constant 0 : index
    %43 = vector.load %arg3[%c0_22, %c0_23] : memref<8x16xf32, #tpu.memory_space<vmem>>, vector<8x16xf32>
    %44 = arith.addf %42, %43 : vector<8x16xf32>
    %cst_24 = arith.constant dense<0xFF800000> : vector<8xf32>
    %45 = vector.multi_reduction <maximumf>, %44, %cst_24 [1] : vector<8x16xf32> to vector<8xf32>
    %46 = vector.shape_cast %45 : vector<8xf32> to vector<8x1xf32>
    %47 = vector.broadcast %46 : vector<8x1xf32> to vector<8x16xf32>
    %48 = arith.subf %44, %47 : vector<8x16xf32>
    %49 = math.exp %48 : vector<8x16xf32>
    %cst_25 = arith.constant dense<0.000000e+00> : vector<8xf32>
    %50 = vector.multi_reduction <add>, %49, %cst_25 [1] : vector<8x16xf32> to vector<8xf32>
    %51 = vector.shape_cast %50 : vector<8xf32> to vector<8x1xf32>
    %c0_26 = arith.constant 0 : index
    %c0_27 = arith.constant 0 : index
    %52 = vector.load %arg14[%c0_26, %c0_27] : memref<16x64xf32, #tpu.memory_space<vmem>>, vector<16x64xf32>
    %cst_28 = arith.constant dense<0.000000e+00> : vector<8x64xf32>
    %53 = tpu.matmul %49, %52, %cst_28 {dimension_numbers = #tpu.dot_dimension_numbers<[1], [0], [0], [1], [0, 0, 1, 1], [], []>} : vector<8x16xf32>, vector<16x64xf32>, vector<8x64xf32> -> vector<8x64xf32>
    %54 = tpu.reciprocal %51 {approx = true} : vector<8x1xf32> -> vector<8x1xf32>
    %55 = vector.broadcast %54 : vector<8x1xf32> to vector<8x64xf32>
    %56 = arith.mulf %53, %55 : vector<8x64xf32>
    %c0_29 = arith.constant 0 : index
    %c0_30 = arith.constant 0 : index
    %57 = vector.load %arg10[%c0_29, %c0_30] : memref<64x64xf32, #tpu.memory_space<vmem>>, vector<64x64xf32>
    %cst_31 = arith.constant dense<0.000000e+00> : vector<8x64xf32>
    %58 = tpu.matmul %38, %57, %cst_31 {dimension_numbers = #tpu.dot_dimension_numbers<[1], [0], [0], [1], [0, 0, 1, 1], [], []>} : vector<8x64xf32>, vector<64x64xf32>, vector<8x64xf32> -> vector<8x64xf32>
    %59 = arith.addf %7, %58 : vector<8x64xf32>
    %c0_32 = arith.constant 0 : index
    %c0_33 = arith.constant 0 : index
    %60 = vector.load %arg11[%c0_32, %c0_33] : memref<64x64xf32, #tpu.memory_space<vmem>>, vector<64x64xf32>
    %cst_34 = arith.constant dense<0.000000e+00> : vector<8x64xf32>
    %61 = tpu.matmul %56, %60, %cst_34 {dimension_numbers = #tpu.dot_dimension_numbers<[1], [0], [0], [1], [0, 0, 1, 1], [], []>} : vector<8x64xf32>, vector<64x64xf32>, vector<8x64xf32> -> vector<8x64xf32>
    %62 = arith.addf %59, %61 : vector<8x64xf32>
    %c0_35 = arith.constant 0 : index
    %c0_36 = arith.constant 0 : index
    %c0_37 = arith.constant 0 : index
    %63 = vector.load %arg12[%c0_35, %c0_36, %c0_37] : memref<1x8x64xf32, #tpu.memory_space<vmem>>, vector<1x8x64xf32>
    %64 = vector.shape_cast %63 : vector<1x8x64xf32> to vector<8x64xf32>
    %65 = vector.shape_cast %62 : vector<8x64xf32> to vector<1x8x64xf32>
    tpu.vector_store %arg12[%c0_35, %c0_36, %c0_37], %65 {strides = array<i32>} : memref<1x8x64xf32, #tpu.memory_space<vmem>>, vector<1x8x64xf32>,
    return
  }
  func.func @transform_0(%arg0: i32, %arg1: i32) -> (i32, i32, i32) {
    %c0_i32 = arith.constant 0 : i32
    %c0_i32_0 = arith.constant 0 : i32
    %c0_i32_1 = arith.constant 0 : i32
    return %arg0, %c0_i32, %c0_i32_0 : i32, i32, i32
  }
  func.func @transform_1(%arg0: i32, %arg1: i32) -> (i32, i32) {
    %c0_i32 = arith.constant 0 : i32
    %c0_i32_0 = arith.constant 0 : i32
    return %arg1, %c0_i32 : i32, i32
  }
  func.func @transform_2(%arg0: i32, %arg1: i32) -> (i32, i32) {
    %c0_i32 = arith.constant 0 : i32
    %c0_i32_0 = arith.constant 0 : i32
    %c0_i32_1 = arith.constant 0 : i32
    return %c0_i32, %c0_i32_0 : i32, i32
  }
  func.func @transform_3(%arg0: i32, %arg1: i32) -> (i32, i32) {
    %c0_i32 = arith.constant 0 : i32
    %c0_i32_0 = arith.constant 0 : i32
    %c0_i32_1 = arith.constant 0 : i32
    return %c0_i32, %c0_i32_0 : i32, i32
  }
  func.func @transform_4(%arg0: i32, %arg1: i32) -> (i32, i32) {
    %c0_i32 = arith.constant 0 : i32
    %c0_i32_0 = arith.constant 0 : i32
    %c0_i32_1 = arith.constant 0 : i32
    return %c0_i32, %c0_i32_0 : i32, i32
  }
  func.func @transform_5(%arg0: i32, %arg1: i32) -> (i32, i32) {
    %c0_i32 = arith.constant 0 : i32
    %c0_i32_0 = arith.constant 0 : i32
    %c0_i32_1 = arith.constant 0 : i32
    return %c0_i32, %c0_i32_0 : i32, i32
  }
  func.func @transform_6(%arg0: i32, %arg1: i32) -> (i32, i32) {
    %c0_i32 = arith.constant 0 : i32
    %c0_i32_0 = arith.constant 0 : i32
    %c0_i32_1 = arith.constant 0 : i32
    return %c0_i32, %c0_i32_0 : i32, i32
  }
  func.func @transform_7(%arg0: i32, %arg1: i32) -> (i32, i32) {
    %c0_i32 = arith.constant 0 : i32
    %c0_i32_0 = arith.constant 0 : i32
    %c0_i32_1 = arith.constant 0 : i32
    return %c0_i32, %c0_i32_0 : i32, i32
  }
  func.func @transform_8(%arg0: i32, %arg1: i32) -> (i32, i32) {
    %c0_i32 = arith.constant 0 : i32
    %c0_i32_0 = arith.constant 0 : i32
    %c0_i32_1 = arith.constant 0 : i32
    return %c0_i32, %c0_i32_0 : i32, i32
  }
  func.func @transform_9(%arg0: i32, %arg1: i32) -> (i32, i32) {
    %c0_i32 = arith.constant 0 : i32
    %c0_i32_0 = arith.constant 0 : i32
    %c0_i32_1 = arith.constant 0 : i32
    return %c0_i32, %c0_i32_0 : i32, i32
  }
  func.func @transform_10(%arg0: i32, %arg1: i32) -> (i32, i32, i32) {
    %c0_i32 = arith.constant 0 : i32
    %c0_i32_0 = arith.constant 0 : i32
    return %arg0, %arg1, %c0_i32 : i32, i32, i32
  }
}

</mosaic_0001>

<bundles_post_ra>
// kernel: attention_layer.1
= control target key start
LH: loop header
LB: loop body
LE: loop exit
PB: predicated region body
PF: predicated region fallthrough
CT: control target
= control target key end

     0   :  { %15 = vsyncpa [#allocation5], 0  ;;  %s2367_s0 = inlined_call_operand.vmem [shape: f32[2,16,64], index: 0, kind: input, shape index: {}]   ;;  %s2368_s1 = inlined_call_operand.vmem [shape: f32[16,16], index: 1, kind: input, shape index: {}]   ;;  %s2369_s2 = inlined_call_operand.vmem [shape: f32[64,128], index: 2, kind: input, shape index: {}]   ;;  %s2370_s3 = inlined_call_operand.vmem [shape: f32[64,128], index: 3, kind: input, shape index: {}]   ;;  %s2371_s4 = inlined_call_operand.vmem [shape: f32[64,64], index: 4, kind: input, shape index: {}]   ;;  %s2372_s5 = inlined_call_operand.vmem [shape: f32[64,64], index: 5, kind: input, shape index: {}]   ;;  %s2373_s6 = inlined_call_operand.vmem [shape: f32[64,64], index: 6, kind: input, shape index: {}]   ;;  %s2374_s7 = inlined_call_operand.vmem [shape: f32[64,64], index: 7, kind: input, shape index: {}]   ;;  %s2375_s8 = inlined_call_operand.vmem [shape: f32[64,64], index: 8, kind: input, shape index: {}]   ;;  %s2376_s9 = inlined_call_operand.vmem [shape: f32[64,64], index: 9, kind: input, shape index: {}]   ;;  %s2377_s10 = inlined_call_operand.hbm [shape: f32[2,16,64], index: 10, kind: output, shape index: {}]  }
   0x1   :  { %17 = vsyncpa [#allocation5 + $0x1], 0  ;;  %s1893_s13 = smov 0   ;;  %s1895_s14 = smov 0  }
   0x2   :  { %s1897_s15 = smov 0   ;;  %s1899_s16 = smov 0  }
   0x3   :  { %s1901_s17 = smov 0   ;;  %s1903_s18 = smov 0  }
   0x4   :  { %s1905_s19 = smov 0   ;;  %s1907_s20 = smov 0  }
   0x5 LB: > { %2384 = sst [smem:[#allocation7_spill]] %s1807_s15  ;;  %s1365_s21 = sadd.s32 4294967295, %s1827_s20   ;;  %s1827_s20 = sphi %s1907_s20, %s23_s20   ;;  %s1823_s19 = sphi %s1905_s19, %s2400_s19   ;;  %s1819_s18 = sphi %s1903_s18, %s2399_s18   ;;  %s1815_s17 = sphi %s1901_s17, %s2398_s17   ;;  %s1811_s16 = sphi %s1899_s16, %s2403_s16   ;;  %s1807_s15 = sphi %s1897_s15, %s2396_s15   ;;  %s1803_s14 = sphi %s1895_s14, %s2402_s14   ;;  %s1799_s13 = sphi %s1893_s13, %s2401_s13  }
   0x6   : > { %2385 = sst [smem:[#allocation8_spill]] %s1819_s18  ;;  %s1366_s22 = sadd.s32 4294967294, %s1827_s20  }
   0x7   : > { %2386 = sst [smem:[#allocation9_spill]] %s1823_s19  ;;  %s32_s23 = sadd.s32 1, %s1819_s18 }
   0x8   : > { %p33_p0 = scmp.ge.s32.totalorder %s32_s23, 2  ;;  %s35_s24 = sadd.s32 1, %s1823_s19 }
   0x9   : > { %p274_p1 = scmp.ne.s32.totalorder %s1807_s15, %s1803_s14  ;;  %p275_p2 = scmp.eq.s32.totalorder %s1365_s21, 3 }
   0xa   : > { %s2405_s23 = smov (%p33_p0, %s32_s23), 0  ;;  %s2407_s24 = smov (!%p33_p0, %s35_s24), %s1823_s19 }
   0xb   : > { %2387 = sst [smem:[#allocation10_spill]] %s2405_s23  ;;  %s260_s25 = ssub.s32 %s1819_s18, %s2405_s23 }
   0xc   : > { %p1944_p3 = por %p275_p2, %p274_p1  ;;  %p37_p4 = scmp.ge.s32.totalorder %s2407_s24, 2 }
   0xd   : > { %p280_p5 = scmp.ne.s32.totalorder %s1803_s14, %s1799_s13  ;;  %p281_p6 = scmp.eq.s32.totalorder %s1366_s22, 3 }
   0xe   : > { %p1369_p7 = scmp.ge.s32.totalorder %s1827_s20, 1  ;;  %s2409_s24 = smov (%p37_p4, %s2407_s24), 0 }
   0xf   : > { %2389 = sst [smem:[#allocation11_spill]] %s2409_s24  ;;  %p1953_p8 = por %p281_p6, %p280_p5 }
  0x10   : > { %p338_p9 = scmp.lt.s32.totalorder %s1827_s20, 5  ;;  %s259_s28 = ssub.s32 %s1823_s19, %s2409_s24 }
  0x11   : > { %s264_s29 = sadd.s32 1, %s1807_s15  ;;  %s261_s30 = sor.u32 %s260_s25, %s259_s28 }
  0x12   : > { %p339_p10 = pnand %p1369_p7, %p338_p9  ;;  %p262_p11 = scmp.eq.s32.totalorder %s261_s30, 0 }
  0x13   : > { %s2383_s12 = sand.u32 (!%p339_p10), 1, %s1803_s14   ;;  %p380_p12 = scmp.lt.s32.totalorder (!%p339_p10), %s1815_s17, 1 }
  0x14   : > { %s1962_s11 = scalar_select %p262_p11, %s1807_s15, %s264_s29  }
  0x15   : > { %342 = sbr.rel (%p339_p10) target bundleno = 1829 (0x725), region = 60  ;;  %s1968_s21 = sshll.u32 (!%p339_p10), %s2383_s12, 3 }
  0x16   : > { %2391 = sst [smem:[#allocation12_spill]] %s1962_s11  ;;  %p385_p13 = scmp.lt.s32.totalorder (!%p339_p10), %s1811_s16, 1 }
  0x17   : > { %p1374_p0 = scmp.ne.s32.totalorder (!%p339_p10), %s1811_s16, 0 }
  0x1a   : > { %s381_s22 = scalar_select %p380_p12, %s1815_s17, 1 }
  0x1b   : > { %s386_s25 = scalar_select %p385_p13, %s1811_s16, 1 }
  0x1c   : > { %s1391_s28 = sshll.u32 %s381_s22, 4  ;;  %392 = sbr.rel (%p1374_p0) target bundleno = 572 (0x23c), region = 64 }
  0x1d   : > { %s1976_s24 = scalar_lea.vmem %s2367_s0, %s1391_s28  ;;  %s1373_s23 = sshll.u32 %s386_s25, 3 }
  0x1e   : > { %s1981_s11 = scalar_lea.vmem %s2368_s1, %s1373_s23  ;;  %s1985_s12 = smov (!%p1374_p0), 0  }
  0x21 LB: >> { %s1991_s22 = sshll.u32 %s1831_s12, 3  ;;  %vm402_vm0 = vcmask 523264   ;;  %v1833_v7 = vmov 0.0   ;;  %v424_v8 = vld [vmem:[%s2370_s3 + $0x38] sm:$0xff]  ;;  %v423_v10 = vld [vmem:[%s2370_s3 + $0x30] sm:$0xff]  ;;  %v422_v12 = vld [vmem:[%s2370_s3 + $0x28] sm:$0xff]  ;;  %s1831_s12 = sphi %s1985_s12, %s398_s12  }
  0x22   : >> { %s400_s18 = scalar_lea.vmem %s1976_s24, %s1991_s22  ;;  %1470 = vmatprep.subr.mxu0 %v1833_v7  ;;  %1489 = vmatprep.subr.mxu1 %v1833_v7  ;;  %v505_v9 = vld [vmem:[%s2373_s6 + $0x38] sm:$0xff]  ;;  %v504_v11 = vld [vmem:[%s2373_s6 + $0x30] sm:$0xff]  ;;  %v503_v13 = vld [vmem:[%s2373_s6 + $0x28] sm:$0xff]  ;;  %vm1834_vm1 = vmmov 0   ;;  %s660_s19 = scalar_lea.vmem [#allocation2], %s1991_s22 }
  0x23   : >> { %v401_v0 = vld [vmem:[%s400_s18] sm:$0xff]  ;;  %1471 = vmatpush3.msra.mxu0 %v424_v8  ;;  %1490 = vmatpush3.msra.mxu1 %v505_v9  ;;  %v420_v16 = vld [vmem:[%s2370_s3 + $0x18] sm:$0xff]  ;;  %v419_v18 = vld [vmem:[%s2370_s3 + $0x10] sm:$0xff]  ;;  %s662_s23 = scalar_lea.vmem [#allocation3], %s1991_s22  ;;  %s398_s12 = sadd.s32 1, %s1831_s12  }
  0x24   : >> { %v403_v1 = vsel %vm402_vm0, %v401_v0, 0.0  ;;  %1472 = vmatprep.subr.mxu0 %v1833_v7  ;;  %1491 = vmatprep.subr.mxu1 %v1833_v7  ;;  %v421_v14 = vld [vmem:[%s2370_s3 + $0x20] sm:$0xff]  ;;  %v501_v17 = vld [vmem:[%s2373_s6 + $0x18] sm:$0xff]  ;;  %v500_v19 = vld [vmem:[%s2373_s6 + $0x10] sm:$0xff]  ;;  %p395_p1 = scmp.ge.s32.totalorder %s398_s12, 2  }
  0x25   : >> { %404 = vadd.xlane.f32.xlu0 %v403_v1  ;;  %1473 = vmatpush3.msra.mxu0 %v423_v10  ;;  %v502_v15 = vld [vmem:[%s2373_s6 + $0x20] sm:$0xff]  ;;  %v418_v20 = vld [vmem:[%s2370_s3 + $0x8] sm:$0xff]  ;;  %v583_v29 = vld [vmem:[%s2374_s7 + $0x38] sm:$0xff] }
  0x26   : >> { %1474 = vmatprep.subr.mxu0 %v1833_v7  ;;  %1492 = vmatpush3.msra.mxu1 %v504_v11  ;;  %v499_v21 = vld [vmem:[%s2373_s6 + $0x8] sm:$0xff]  ;;  %v417_v22 = vld [vmem:[%s2370_s3] sm:$0xff]  ;;  %v582_v30 = vld [vmem:[%s2374_s7 + $0x30] sm:$0xff] }
  0x27   : >> { %1475 = vmatpush3.msra.mxu0 %v422_v12  ;;  %1493 = vmatprep.subr.mxu1 %v1833_v7  ;;  %v498_v23 = vld [vmem:[%s2373_s6] sm:$0xff]  ;;  %v581_v31 = vld [vmem:[%s2374_s7 + $0x28] sm:$0xff]  ;;  %v579_v33 = vld [vmem:[%s2374_s7 + $0x18] sm:$0xff] }
  0x28   : >> { %1476 = vmatprep.subr.mxu0 %v1833_v7  ;;  %1494 = vmatpush3.msra.mxu1 %v503_v13  ;;  %v580_v32 = vld [vmem:[%s2374_s7 + $0x20] sm:$0xff]  ;;  %v578_v34 = vld [vmem:[%s2374_s7 + $0x10] sm:$0xff]  ;;  %v577_v35 = vld [vmem:[%s2374_s7 + $0x8] sm:$0xff] }
  0x29   : >> { %1477 = vmatpush3.msra.mxu0 %v421_v14  ;;  %1495 = vmatprep.subr.mxu1 %v1833_v7  ;;  %v576_v36 = vld [vmem:[%s2374_s7] sm:$0xff] }
  0x2a   : >> { %1478 = vmatprep.subr.mxu0 %v1833_v7  ;;  %1496 = vmatpush3.msra.mxu1 %v502_v15 }
  0x2b   : >> { %1479 = vmatpush3.msra.mxu0 %v420_v16  ;;  %1497 = vmatprep.subr.mxu1 %v1833_v7 }
  0x2c   : >> { %1480 = vmatprep.subr.mxu0 %v1833_v7  ;;  %1498 = vmatpush3.msra.mxu1 %v501_v17 }
  0x2d   : >> { %1481 = vmatpush3.msra.mxu0 %v419_v18  ;;  %1499 = vmatprep.subr.mxu1 %v1833_v7 }
  0x2e   : >> { %1482 = vmatprep.subr.mxu0 %v1833_v7  ;;  %1500 = vmatpush3.msra.mxu1 %v500_v19 }
  0x2f   : >> { %1483 = vmatpush3.msra.mxu0 %v418_v20  ;;  %1501 = vmatprep.subr.mxu1 %v1833_v7 }
  0x30   : >> { %1484 = vmatprep.subr.mxu0 %v1833_v7  ;;  %1502 = vmatpush3.msra.mxu1 %v499_v21 }
  0x31   : >> { %1485 = vmatpush3.msra.mxu0 %v417_v22  ;;  %1503 = vmatprep.subr.mxu1 %v1833_v7 }
  0x32   : >> { %1486 = vmatprep.mubr.msk.f32.mxu0 %vm1834_vm1, %v1833_v7  ;;  %1504 = vmatpush3.msra.mxu1 %v498_v23 }
  0x33   : >> { %1505 = vmatprep.mubr.msk.f32.mxu1 %vm1834_vm1, %v1833_v7  ;;  %1508 = vmatprep.subr.mxu0 %v1833_v7 }
  0xae   : >> { %v405_v2 = vpop.xlane.xlu0 %404 }
  0xaf   : >> { %v407_v3 = vmul.f32 0.015625, %v405_v2 }
  0xb1   : >> { %v408_v4 = vsub.f32 %v401_v0, %v407_v3 }
  0xb3   : >> { %v409_v5 = vmul.f32 %v408_v4, %v408_v4 }
  0xb5   : >> { %v410_v6 = vsel %vm402_vm0, %v409_v5, 0.0 }
  0xb6   : >> { %411 = vadd.xlane.f32.xlu0 %v410_v6 }
 0x13f   : >> { %v412_v24 = vpop.xlane.xlu0 %411 }
 0x140   : >> { %v413_v25 = vmul.f32 0.015625, %v412_v24 }
 0x142   : >> { %v414_v26 = vadd.f32 1e-05, %v413_v25 }
 0x144   : >> { %1719 = vrsqrt.f32 %v414_v26 }
 0x151   : >> { %v1720_v27 = vpop.eup %1719 }
 0x152   : >> { %v416_v28 = vmul.f32 %v1720_v27, %v408_v4 }
 0x154   : >> { %1487 = vmatmul.mubr.msk.f32.vlgmr.msra.gmra.mxu0 %vm402_vm0, %v416_v28  ;;  %1506 = vmatmul.mubr.msk.f32.vlgmr.msra.gmra.mxu1 %vm402_vm0, %v416_v28 }
 0x155   : >> { %1509 = vmatpush3.msra.mxu0 %v583_v29  ;;  %1524 = vmatprep.mubr.msk.f32.mxu0 %vm1834_vm1, %v1833_v7 }
 0x156   : >> { %1510 = vmatprep.subr.mxu0 %v1833_v7 }
 0x157   : >> { %1511 = vmatpush3.msra.mxu0 %v582_v30 }
 0x158   : >> { %1512 = vmatprep.subr.mxu0 %v1833_v7 }
 0x159   : >> { %1513 = vmatpush3.msra.mxu0 %v581_v31 }
 0x15a   : >> { %1514 = vmatprep.subr.mxu0 %v1833_v7 }
 0x15b   : >> { %1515 = vmatpush3.msra.mxu0 %v580_v32 }
 0x15c   : >> { %1516 = vmatprep.subr.mxu0 %v1833_v7 }
 0x15d   : >> { %1517 = vmatpush3.msra.mxu0 %v579_v33 }
 0x15e   : >> { %1518 = vmatprep.subr.mxu0 %v1833_v7 }
 0x15f   : >> { %1519 = vmatpush3.msra.mxu0 %v578_v34 }
 0x160   : >> { %1520 = vmatprep.subr.mxu0 %v1833_v7 }
 0x161   : >> { %1521 = vmatpush3.msra.mxu0 %v577_v35 }
 0x162   : >> { %1522 = vmatprep.subr.mxu0 %v1833_v7 }
 0x163   : >> { %1523 = vmatpush3.msra.mxu0 %v576_v36 }
 0x164   : >> { %1525 = vmatmul.mubr.msk.f32.vlgmr.msra.gmra.mxu0 %vm402_vm0, %v416_v28 }
 0x214   : >> { %v494_v37 = vpop.f32.mrf.mxu0  ;;  %v572_v38 = vpop.f32.mrf.mxu1 }
 0x215   : >> { %661 = vst [vmem:[%s660_s19] sm:$0xff] %v494_v37 }
 0x216   : >> { %v1488_v39 = vpop.f32.mrf.mxu0  ;;  %v1507_v40 = vpop.f32.mrf.mxu1 }
 0x224   : >> { %v650_v41 = vpop.f32.mrf.mxu0 }
 0x225   : >> { %v655_v42 = vmul.f32 0.70710677, %v650_v41  ;;  %v654_v45 = vmul.f32 0.5, %v650_v41 }
 0x226   : >> { %v1526_v43 = vpop.f32.mrf.mxu0 }
 0x227   : >> { %1721 = verf.f32 %v655_v42 }
 0x234   : >> { %v1722_v44 = vpop.eup %1721 }
 0x235   : >> { %v657_v46 = vadd.f32 1.0, %v1722_v44 }
 0x237   : >> { %v658_v47 = vmul.f32 %v657_v46, %v654_v45  ;;  %397 = sbr.rel (!%p395_p1) target bundleno = 33 (0x21), region = 113 }
 0x239   : >> { %v659_v48 = vmul.f32 %v658_v47, %v572_v38 }
 0x23b   : >> { %663 = vst.msk [vmem:[%s662_s23] sm:$0xff] %vm402_vm0, %v659_v48 }
 0x23c PF: > { %s1379_s25 = sshll.u32 %s1811_s16, 3  ;;  %vm667_vm2 = vcmask 523264   ;;  %v1835_v56 = vmov 0.0   ;;  %v689_v57 = vld [vmem:[%s2369_s2 + $0x38] sm:$0xff]  ;;  %v688_v59 = vld [vmem:[%s2369_s2 + $0x30] sm:$0xff]  ;;  %v687_v61 = vld [vmem:[%s2369_s2 + $0x28] sm:$0xff] }
 0x23d   : > { %s665_s28 = scalar_lea.vmem %s1976_s24, %s1379_s25  ;;  %1527 = vmatprep.subr.mxu0 %v1835_v56  ;;  %1546 = vmatprep.subr.mxu1 %v1835_v56  ;;  %v770_v58 = vld [vmem:[%s2371_s4 + $0x38] sm:$0xff]  ;;  %v769_v60 = vld [vmem:[%s2371_s4 + $0x30] sm:$0xff]  ;;  %v768_v62 = vld [vmem:[%s2371_s4 + $0x28] sm:$0xff]  ;;  %vm1836_vm3 = vmmov 0   ;;  %vm1000_vm4 = vcmask 130048   ;;  %s1387_s24 = sshll.u32 %s1815_s17, 1 }
 0x23e   : > { %v2110_v49 = vld [vmem:[%s665_s28] sm:$0xff]  ;;  %1528 = vmatpush3.msra.mxu0 %v689_v57  ;;  %1547 = vmatpush3.msra.mxu1 %v770_v58  ;;  %v685_v1 = vld [vmem:[%s2369_s2 + $0x18] sm:$0xff]  ;;  %v684_v3 = vld [vmem:[%s2369_s2 + $0x10] sm:$0xff]  ;;  %s1264_s12 = sadd.s32 %s1811_s16, %s1387_s24  ;;  %s2392_s30 = scalar_lea.vmem [#allocation4], %s1968_s21 }
 0x23f   : > { %v668_v50 = vsel %vm667_vm2, %v2110_v49, 0.0  ;;  %1529 = vmatprep.subr.mxu0 %v1835_v56  ;;  %1548 = vmatprep.subr.mxu1 %v1835_v56  ;;  %v686_v63 = vld [vmem:[%s2369_s2 + $0x20] sm:$0xff]  ;;  %v766_v2 = vld [vmem:[%s2371_s4 + $0x18] sm:$0xff]  ;;  %v765_v4 = vld [vmem:[%s2371_s4 + $0x10] sm:$0xff]  ;;  %s1388_s22 = sshll.u32 %s1264_s12, 7  ;;  %s2393_s19 = smov %s2392_s30 }
 0x240   : > { %669 = vadd.xlane.f32.xlu0 %v668_v50  ;;  %1530 = vmatpush3.msra.mxu0 %v688_v59  ;;  %v767_v0 = vld [vmem:[%s2371_s4 + $0x20] sm:$0xff]  ;;  %v683_v5 = vld [vmem:[%s2369_s2 + $0x8] sm:$0xff]  ;;  %v848_v14 = vld [vmem:[%s2372_s5 + $0x38] sm:$0xff]  ;;  %s2316_s18 = scalar_lea.hbm %s2377_s10, %s1388_s22  ;;  %s2394_s23 = sand.u32 1, %s1803_s14  }
 0x241   : > { %1531 = vmatprep.subr.mxu0 %v1835_v56  ;;  %1549 = vmatpush3.msra.mxu1 %v769_v60  ;;  %v764_v6 = vld [vmem:[%s2371_s4 + $0x8] sm:$0xff]  ;;  %v682_v7 = vld [vmem:[%s2369_s2] sm:$0xff]  ;;  %v847_v16 = vld [vmem:[%s2372_s5 + $0x30] sm:$0xff]  ;;  %s1253_s17 = scalar_lea.sflag [#allocation5], %s2394_s23  ;;  %s1837_s25 = smov [#allocation4]  }
 0x242   : > { %1532 = vmatpush3.msra.mxu0 %v687_v61  ;;  %1550 = vmatprep.subr.mxu1 %v1835_v56  ;;  %v763_v8 = vld [vmem:[%s2371_s4] sm:$0xff]  ;;  %v926_v15 = vld [vmem:[#allocation2 + $0x8] sm:$0xff]  ;;  %v844_v20 = vld [vmem:[%s2372_s5 + $0x18] sm:$0xff]  ;;  %s1735_s28 = sshll.u32 %s1837_s25, 4  ;;  %s1736_s28 = int_to_ptr.vmem [resolvable:$false] %s1735_s28 }
 0x243   : > { %1533 = vmatprep.subr.mxu0 %v1835_v56  ;;  %1551 = vmatpush3.msra.mxu1 %v768_v62  ;;  %v846_v17 = vld [vmem:[%s2372_s5 + $0x28] sm:$0xff]  ;;  %v925_v18 = vld [vmem:[#allocation2] sm:$0xff]  ;;  %v843_v21 = vld [vmem:[%s2372_s5 + $0x10] sm:$0xff]  ;;  %s1737_s24 = scalar_lea.vmem %s1736_s28, 256 }
 0x244   : > { %1534 = vmatpush3.msra.mxu0 %v686_v63  ;;  %1552 = vmatprep.subr.mxu1 %v1835_v56  ;;  %v845_v19 = vld [vmem:[%s2372_s5 + $0x20] sm:$0xff]  ;;  %v842_v22 = vld [vmem:[%s2372_s5 + $0x8] sm:$0xff]  ;;  %v1011_v42 = vld [vmem:[#allocation3 + $0x8] sm:$0xff] }
 0x245   : > { %1535 = vmatprep.subr.mxu0 %v1835_v56  ;;  %1553 = vmatpush3.msra.mxu1 %v767_v0  ;;  %v841_v23 = vld [vmem:[%s2372_s5] sm:$0xff]  ;;  %v1010_v43 = vld [vmem:[#allocation3] sm:$0xff]  ;;  %v1094_v47 = vld [vmem:[%s2375_s8 + $0x38] sm:$0xff] }
 0x246   : > { %1536 = vmatpush3.msra.mxu0 %v685_v1  ;;  %1554 = vmatprep.subr.mxu1 %v1835_v56  ;;  %v998_v37 = vld [vmem:[%s1981_s11] sm:$0xff]  ;;  %v1088_v57 = vld [vmem:[%s2375_s8 + $0x8] sm:$0xff]  ;;  %v1176_v58 = vld [vmem:[%s2376_s9 + $0x38] sm:$0xff]  ;;  %s1268_s11 = sshll.u32 %s2392_s30, 4  ;;  %s1269_s11 = int_to_ptr.vmem [resolvable:$true] %s1268_s11 }
 0x247   : > { %1537 = vmatprep.subr.mxu0 %v1835_v56  ;;  %1555 = vmatpush3.msra.mxu1 %v766_v2  ;;  %v1175_v59 = vld [vmem:[%s2376_s9 + $0x30] sm:$0xff]  ;;  %v1087_v60 = vld [vmem:[%s2375_s8] sm:$0xff]  ;;  %v1174_v61 = vld [vmem:[%s2376_s9 + $0x28] sm:$0xff]  ;;  %s1731_s16 = scalar_lea.vmem %s1269_s11, 128  ;;  %p1738_p6 = scmp.lt.s32.totalorder %s1269_s11, %s1736_s28 }
 0x248   : > { %1538 = vmatpush3.msra.mxu0 %v684_v3  ;;  %1556 = vmatprep.subr.mxu1 %v1835_v56  ;;  %v1173_v62 = vld [vmem:[%s2376_s9 + $0x20] sm:$0xff]  ;;  %v1172_v63 = vld [vmem:[%s2376_s9 + $0x18] sm:$0xff]  ;;  %v1171_v0 = vld [vmem:[%s2376_s9 + $0x10] sm:$0xff]  ;;  %p1732_p2 = scmp.ne.s32.totalorder %s1269_s11, %s1731_s16  ;;  %p1739_p7 = scmp.lt.s32.totalorder %s1737_s24, %s1731_s16 }
 0x249   : > { %1539 = vmatprep.subr.mxu0 %v1835_v56  ;;  %1557 = vmatpush3.msra.mxu1 %v765_v4  ;;  %v1170_v1 = vld [vmem:[%s2376_s9 + $0x8] sm:$0xff]  ;;  %v1169_v2 = vld [vmem:[%s2376_s9] sm:$0xff] }
 0x24a   : > { %1540 = vmatpush3.msra.mxu0 %v683_v5  ;;  %1558 = vmatprep.subr.mxu1 %v1835_v56  ;;  %p1733_p4 = pnand %p1732_p2, %p1944_p3  ;;  %p1740_p9 = por %p1739_p7, %p1738_p6 }
 0x24b   : > { %1541 = vmatprep.subr.mxu0 %v1835_v56  ;;  %1559 = vmatpush3.msra.mxu1 %v764_v6 }
 0x24c   : > { %1542 = vmatpush3.msra.mxu0 %v682_v7  ;;  %1560 = vmatprep.subr.mxu1 %v1835_v56  ;;  %p1734_p5 = pneg %p1733_p4 }
 0x24d   : > { %1543 = vmatprep.mubr.msk.f32.mxu0 %vm1836_vm3, %v1835_v56  ;;  %1561 = vmatpush3.msra.mxu1 %v763_v8 }
 0x24e   : > { %1562 = vmatprep.mubr.msk.f32.mxu1 %vm1836_vm3, %v1835_v56  ;;  %1565 = vmatprep.subr.mxu0 %v1835_v56  ;;  %p1741_p10 = pnand %p1740_p9, %p1734_p5 }
 0x24f   : > { %1584 = vmatprep.subr.mxu1 %v1835_v56 }
 0x2c9   : > { %v670_v51 = vpop.xlane.xlu0 %669 }
 0x2ca   : > { %v672_v52 = vmul.f32 0.015625, %v670_v51  ;;  %v1093_v51 = vld [vmem:[%s2375_s8 + $0x30] sm:$0xff] }
 0x2cc   : > { %v2115_v53 = vsub.f32 %v2110_v49, %v672_v52  ;;  %v1092_v52 = vld [vmem:[%s2375_s8 + $0x28] sm:$0xff] }
 0x2ce   : > { %v674_v54 = vmul.f32 %v2115_v53, %v2115_v53 }
 0x2d0   : > { %v675_v55 = vsel %vm667_vm2, %v674_v54, 0.0  ;;  %v1090_v54 = vld [vmem:[%s2375_s8 + $0x18] sm:$0xff] }
 0x2d1   : > { %676 = vadd.xlane.f32.xlu0 %v675_v55  ;;  %v1089_v55 = vld [vmem:[%s2375_s8 + $0x10] sm:$0xff] }
 0x35a   : > { %v677_v9 = vpop.xlane.xlu0 %676 }
 0x35b   : > { %v678_v10 = vmul.f32 0.015625, %v677_v9 }
 0x35d   : > { %v679_v11 = vadd.f32 1e-05, %v678_v10 }
 0x35f   : > { %1723 = vrsqrt.f32 %v679_v11 }
 0x36c   : > { %v1724_v12 = vpop.eup %1723 }
 0x36d   : > { %v681_v13 = vmul.f32 %v1724_v12, %v2115_v53  ;;  %v1091_v53 = vld [vmem:[%s2375_s8 + $0x20] sm:$0xff] }
 0x36f   : > { %1544 = vmatmul.mubr.msk.f32.vlgmr.msra.gmra.mxu0 %vm667_vm2, %v681_v13  ;;  %1563 = vmatmul.mubr.msk.f32.vlgmr.msra.gmra.mxu1 %vm667_vm2, %v681_v13 }
 0x370   : > { %1566 = vmatpush3.msra.mxu0 %v848_v14  ;;  %1581 = vmatprep.mubr.msk.f32.mxu0 %vm1836_vm3, %v1835_v56 }
 0x371   : > { %1567 = vmatprep.subr.mxu0 %v1835_v56  ;;  %1585 = vmatpush3.xpose.msra.mxu1 %v926_v15 }
 0x372   : > { %1568 = vmatpush3.msra.mxu0 %v847_v16  ;;  %1586 = vmatprep.subr.mxu1 %v1835_v56 }
 0x373   : > { %1569 = vmatprep.subr.mxu0 %v1835_v56  ;;  %1588 = vmatprep.mubr.msk.f32.mxu1 %vm1836_vm3, %v1835_v56 }
 0x374   : > { %1570 = vmatpush3.msra.mxu0 %v846_v17 }
 0x375   : > { %1571 = vmatprep.subr.mxu0 %v1835_v56  ;;  %1587 = vmatpush3.xpose.msra.mxu1 %v925_v18 }
 0x376   : > { %1572 = vmatpush3.msra.mxu0 %v845_v19  ;;  %1591 = vmatprep.subr.mxu1 %v1835_v56 }
 0x377   : > { %1573 = vmatprep.subr.mxu0 %v1835_v56 }
 0x378   : > { %1574 = vmatpush3.msra.mxu0 %v844_v20 }
 0x379   : > { %1575 = vmatprep.subr.mxu0 %v1835_v56 }
 0x37a   : > { %1576 = vmatpush3.msra.mxu0 %v843_v21 }
 0x37b   : > { %1577 = vmatprep.subr.mxu0 %v1835_v56 }
 0x37c   : > { %1578 = vmatpush3.msra.mxu0 %v842_v22 }
 0x37d   : > { %1579 = vmatprep.subr.mxu0 %v1835_v56 }
 0x37e   : > { %1580 = vmatpush3.msra.mxu0 %v841_v23 }
 0x37f   : > { %1582 = vmatmul.mubr.msk.f32.vlgmr.msra.gmra.mxu0 %vm667_vm2, %v681_v13  ;;  %1617 = vmatprep.subr.mxu0 %v1835_v56 }
 0x380   : > { %1633 = vmatprep.mubr.msk.f32.mxu0 %vm1836_vm3, %v1835_v56  ;;  %1618 = vmatpush3.msra.mxu0 %v1176_v58 }
 0x381   : > { %1619 = vmatprep.subr.mxu0 %v1835_v56 }
 0x382   : > { %1620 = vmatpush3.msra.mxu0 %v1175_v59 }
 0x383   : > { %1621 = vmatprep.subr.mxu0 %v1835_v56 }
 0x384   : > { %1622 = vmatpush3.msra.mxu0 %v1174_v61 }
 0x385   : > { %1623 = vmatprep.subr.mxu0 %v1835_v56 }
 0x386   : > { %1624 = vmatpush3.msra.mxu0 %v1173_v62 }
 0x387   : > { %1625 = vmatprep.subr.mxu0 %v1835_v56 }
 0x388   : > { %1626 = vmatpush3.msra.mxu0 %v1172_v63 }
 0x389   : > { %1627 = vmatprep.subr.mxu0 %v1835_v56 }
 0x38a   : > { %1628 = vmatpush3.msra.mxu0 %v1171_v0 }
 0x38b   : > { %1629 = vmatprep.subr.mxu0 %v1835_v56 }
 0x38c   : > { %1630 = vmatpush3.msra.mxu0 %v1170_v1 }
 0x38d   : > { %1631 = vmatprep.subr.mxu0 %v1835_v56 }
 0x38e   : > { %1632 = vmatpush3.msra.mxu0 %v1169_v2 }
 0x42f   : > { %v759_v24 = vpop.f32.mrf.mxu0  ;;  %v837_v25 = vpop.f32.mrf.mxu1 }
 0x430   : > { %1589 = vmatmul.mubr.f32.vlgmr.msra.gmra.mxu1 %v759_v24 }
 0x431   : > { %v1545_v26 = vpop.f32.mrf.mxu0  ;;  %v1564_v27 = vpop.f32.mrf.mxu1  ;;  %1595 = vmatprep.mubr.msk.f32.mxu1 %vm1836_vm3, %v1835_v56  ;;  %1592 = vmatpush3.msra.mxu1 %v1011_v42 }
 0x432   : > { %1593 = vmatprep.subr.mxu1 %v1835_v56 }
 0x433   : > { %1594 = vmatpush3.msra.mxu1 %v1010_v43 }
 0x434   : > { %1598 = vmatprep.subr.mxu1 %v1835_v56 }
 0x43f   : > { %v915_v28 = vpop.f32.mrf.mxu0 }
 0x440   : > { %v920_v29 = vmul.f32 0.70710677, %v915_v28  ;;  %v919_v32 = vmul.f32 0.5, %v915_v28 }
 0x441   : > { %v1583_v30 = vpop.f32.mrf.mxu0 }
 0x442   : > { %1725 = verf.f32 %v920_v29 }
 0x44f   : > { %v1726_v31 = vpop.eup %1725 }
 0x450   : > { %v922_v33 = vadd.f32 1.0, %v1726_v31 }
 0x452   : > { %v923_v34 = vmul.f32 %v922_v33, %v919_v32 }
 0x454   : > { %v924_v35 = vmul.f32 %v923_v34, %v837_v25 }
 0x4f0   : > { %v993_v36 = vpop.f32.mrf.mxu1 }
 0x4f1   : > { %v997_v38 = vmul.f32 0.35355338, %v993_v36 }
 0x4f2   : > { %v1590_v39 = vpop.f32.mrf.mxu1 }
 0x4f3   : > { %v999_v40 = vadd.f32 %v998_v37, %v997_v38 }
 0x4f5   : > { %v1001_v41 = vsel %vm1000_vm4, %v999_v40, -inf }
 0x4f6   : > { %1002 = vmax.xlane.f32.xlu1 %v1001_v41 }
 0x57f   : > { %v1003_v44 = vpop.xlane.xlu1 %1002 }
 0x580   : > { %v1004_v45 = vsub.f32 %v999_v40, %v1003_v44 }
 0x582   : > { %v1005_v46 = vmul.f32 1.442695, %v1004_v45 }
 0x584   : > { %1727 = vpow2.f32 %v1005_v46 }
 0x591   : > { %v1728_v48 = vpop.eup %1727 }
 0x592   : > { %1596 = vmatmul.mubr.msk.f32.vlgmr.msra.gmra.mxu1 %vm1000_vm4, %v1728_v48  ;;  %v1007_v50 = vsel %vm1000_vm4, %v1728_v48, 0.0 }
 0x593   : > { %1599 = vmatpush3.msra.mxu1 %v1094_v47  ;;  %1008 = vadd.xlane.f32.xlu1 %v1007_v50 }
 0x594   : > { %1600 = vmatprep.subr.mxu1 %v1835_v56  ;;  %1614 = vmatprep.mubr.msk.f32.mxu1 %vm1836_vm3, %v1835_v56 }
 0x595   : > { %1601 = vmatpush3.msra.mxu1 %v1093_v51 }
 0x596   : > { %1602 = vmatprep.subr.mxu1 %v1835_v56 }
 0x597   : > { %1603 = vmatpush3.msra.mxu1 %v1092_v52 }
 0x598   : > { %1604 = vmatprep.subr.mxu1 %v1835_v56 }
 0x599   : > { %1605 = vmatpush3.msra.mxu1 %v1091_v53 }
 0x59a   : > { %1606 = vmatprep.subr.mxu1 %v1835_v56 }
 0x59b   : > { %1607 = vmatpush3.msra.mxu1 %v1090_v54 }
 0x59c   : > { %1608 = vmatprep.subr.mxu1 %v1835_v56 }
 0x59d   : > { %1609 = vmatpush3.msra.mxu1 %v1089_v55 }
 0x59e   : > { %1610 = vmatprep.subr.mxu1 %v1835_v56 }
 0x59f   : > { %1611 = vmatpush3.msra.mxu1 %v1088_v57 }
 0x5a0   : > { %1612 = vmatprep.subr.mxu1 %v1835_v56 }
 0x5a1   : > { %1613 = vmatpush3.msra.mxu1 %v1087_v60 }
 0x5a2   : > { %1615 = vmatmul.mubr.msk.f32.vlgmr.msra.gmra.mxu1 %vm667_vm2, %v924_v35 }
 0x61c   : > { %v1009_v3 = vpop.xlane.xlu1 %1008 }
 0x61d   : > { %1729 = vrcp.f32 %v1009_v3 }
 0x62a   : > { %v1730_v4 = vpop.eup %1729 }
 0x652   : > { %v1081_v5 = vpop.f32.mrf.mxu1 }
 0x653   : > { %v1086_v6 = vmul.f32 %v1730_v4, %v1081_v5 }
 0x654   : > { %v1597_v7 = vpop.f32.mrf.mxu1 }
 0x655   : > { %1634 = vmatmul.mubr.msk.f32.vlgmr.msra.gmra.mxu0 %vm667_vm2, %v1086_v6 }
 0x662   : > { %v1164_v8 = vpop.f32.mrf.mxu1 }
 0x663   : > { %v1168_v56 = vadd.f32 %v1164_v8, %v2110_v49 }
 0x664   : > { %v1616_v9 = vpop.f32.mrf.mxu1 }
 0x715   : > { %v1246_v10 = vpop.f32.mrf.mxu0 }
 0x716   : > { %v1250_v11 = vadd.f32 %v1246_v10, %v1168_v56 }
 0x717   : > { %v1635_v12 = vpop.f32.mrf.mxu0 }
 0x718   : > { %1251 = vst.msk [vmem:[%s2393_s19] sm:$0xff] %vm667_vm2, %v1250_v11 }
 0x719   : > { %1744 = shalt.err (!%p1741_p10)
}
 0x71a   : > { %s1745_s21 = scalar_lea.hbm %s2316_s18, 128  ;;  %s1749_s30 = scalar_lea.hbm %s2377_s10, 512 }
 0x71b   : > { %p1746_p11 = scmp.ne.s32.totalorder %s2316_s18, %s1745_s21  ;;  %p1750_p0 = scmp.lt.s32.totalorder %s2316_s18, %s2377_s10 }
 0x71c   : > { %p1751_p1 = scmp.lt.s32.totalorder %s1749_s30, %s1745_s21 }
 0x71d   : > { %p1747_p12 = pnand %p1746_p11, %p1944_p3 }
 0x71e   : > { %p1752_p2 = por %p1751_p1, %p1750_p0 }
 0x71f   : > { %p1748_p13 = pneg %p1747_p12 }
 0x721   : > { %p1753_p4 = pnand %p1752_p2, %p1748_p13 }
 0x723   : > { %1756 = shalt.err (!%p1753_p4)
}
 0x724   : > { %1636 = dma.vmem_to_hbm [thread:$0]  (%p1944_p3), %s1269_s11, 128, %s2316_s18, %s1253_s17  }
 0x725 PF: > { %p1642_p5 = scmp.ge.s32.totalorder %s1827_s20, 2  ;;  %s1280_s19 = sand.u32 1, %s1799_s13  }
 0x726   : > { %s1281_s23 = scalar_lea.sflag [#allocation5], %s1280_s19 }
 0x727   : > { %p1639_p6 = pnand %p1642_p5, %p1953_p8 }
 0x729   : > { %p1640_p7 = pneg %p1639_p6 }
 0x72b   : > { %1794 = dma.done.wait (%p1640_p7), %s1281_s23, 128  }
 0x72c   : > { %1796 = vsyncadd (%p1640_p7), %s1281_s23, 4294967168  ;;  %s23_s20 = sadd.s32 1, %s1827_s20   ;;  %s2395_s16 = sld [smem:[#allocation7_spill]] }
 0x72d   : > { %p20_p9 = scmp.ge.s32.totalorder %s23_s20, 6   ;;  %s2396_s15 = sld [smem:[#allocation12_spill]] }
 0x72e   : > { %s2397_s26 = sld [smem:[#allocation8_spill]]  ;;  %s2401_s13 = smov %s1803_s14 }
 0x72f   : > { %s2398_s17 = sld [smem:[#allocation9_spill]] }
 0x730   : > { %s2399_s18 = sld [smem:[#allocation10_spill]]  ;;  %22 = sbr.rel (!%p20_p9) target bundleno = 5 (0x5), region = 124 }
 0x731   : > { %s2400_s19 = sld [smem:[#allocation11_spill]] }
 0x732   : > { %s2402_s14 = smov %s2395_s16 }
 0x734   : > { %s2403_s16 = smov %s2397_s26 }
 0x735   :  { %1286 = vsyncpa [#allocation5], 1 }
 0x736   :  { %1288 = vsyncpa [#allocation5 + $0x1], 1 }

</bundles_post_ra>
